<compile_context>
chip_gen: v7x
topology: tpu7x:2x2x1
jax: 0.10.0
libtpu: 0.0.40
codegen_flags: <defaults>
</compile_context>

<pallas_src>
import functools
from typing import NamedTuple

import jax
import jax.numpy as jnp
from jax.experimental import pallas as pl
from jax.experimental.pallas import tpu as pltpu

LANE = 128     # lane width (last-dim tiling unit)
SUBLANE = 8    # f32 sublane count (second-to-last-dim tiling unit)


class Normal(NamedTuple):
    """Tiny stand-in for torch.distributions.Normal (loc/scale pair)."""
    loc: jax.Array
    scale: jax.Array
    # TODO(synk): torch.distributions.Normal object construction has no Pallas
    # equivalent; we return the (mu, sigma) parameters computed in-kernel.


def _round_up(x, m):
    return (x + m - 1) // m * m


def _actor_kernel(x_ref, w1_ref, b1_ref, wh_ref, bh_ref, out_ref, *, n_actions):
    # hidden = relu(x @ W1 + b1)
    h = jnp.dot(x_ref[...], w1_ref[...], preferred_element_type=jnp.float32)
    h = jnp.maximum(h + b1_ref[...], 0.0)

    # Fused head: z = h @ [Wmu | Wsg | 0-pad] + [bmu | bsg | 0-pad]
    z = jnp.dot(h, wh_ref[...], preferred_element_type=jnp.float32) + bh_ref[...]

    # Per-lane activation select:
    #   cols [0, n_actions)             -> mu    = 2 * tanh(z)
    #   cols [n_actions, 2*n_actions)   -> sigma = 0.5 * sigmoid(z) + 1e-5
    # (padding lanes get sigma's formula; they are sliced off in the wrapper)
    col = jax.lax.broadcasted_iota(jnp.int32, z.shape, dimension=1)
    mu_part = 2.0 * jnp.tanh(z)
    sg_part = 0.5 * jax.nn.sigmoid(z) + 1e-5
    out_ref[...] = jnp.where(col < n_actions, mu_part, sg_part)


@functools.partial(jax.jit, static_argnames=("n_actions",))
def actor_forward(x, w1, b1, w_head, b_head, *, n_actions):
    B, n_states = x.shape
    n_hidden = w1.shape[1]
    head = w_head.shape[1]  # 2*n_actions zero-padded to a multiple of 128

    # Batch tiling: pad B to a multiple of 8 sublanes, tile at up to 512 rows.
    b8 = _round_up(B, SUBLANE)
    tb = min(512, b8)
    b_pad = _round_up(b8, tb)
    if b_pad != B:
        x = jnp.pad(x, ((0, b_pad - B), (0, 0)))

    out = pl.pallas_call(
        functools.partial(_actor_kernel, n_actions=n_actions),
        out_shape=jax.ShapeDtypeStruct((b_pad, head), jnp.float32),
        grid_spec=pltpu.PrefetchScalarGridSpec(
            num_scalar_prefetch=0,
            grid=(b_pad // tb,),
            in_specs=[
                pl.BlockSpec((tb, n_states), lambda i: (i, 0)),        # x tile
                pl.BlockSpec((n_states, n_hidden), lambda i: (0, 0)),  # W1 (resident)
                pl.BlockSpec((1, n_hidden), lambda i: (0, 0)),         # b1
                pl.BlockSpec((n_hidden, head), lambda i: (0, 0)),      # fused head W
                pl.BlockSpec((1, head), lambda i: (0, 0)),             # fused head b
            ],
            out_specs=pl.BlockSpec((tb, head), lambda i: (i, 0)),      # lane-dense slab
        ),
        compiler_params=pltpu.CompilerParams(
            dimension_semantics=("parallel",),     # v7x: split batch across 2 TCs
            vmem_limit_bytes=64 * 1024 * 1024,
        ),
    )(x, w1, b1, w_head, b_head)

    mu = out[:B, :n_actions]
    sigma = out[:B, n_actions:2 * n_actions]
    return mu, sigma


def make_params(key, n_states, n_actions, n_hidden):
    """Deterministic PyTorch-Linear-style init (uniform(-1/sqrt(fan_in), +))."""
    ks = jax.random.split(key, 6)

    def linear(kw, kb, fan_in, fan_out):
        bound = 1.0 / jnp.sqrt(jnp.float32(fan_in))
        # stored as (in, out) -- transpose of PyTorch's (out, in)
        w = jax.random.uniform(kw, (fan_in, fan_out), jnp.float32, -bound, bound)
        b = jax.random.uniform(kb, (1, fan_out), jnp.float32, -bound, bound)
        return w, b

    w1, b1 = linear(ks[0], ks[1], n_states, n_hidden)
    wmu, bmu = linear(ks[2], ks[3], n_hidden, n_actions)
    wsg, bsg = linear(ks[4], ks[5], n_hidden, n_actions)
    return w1, b1, wmu, bmu, wsg, bsg


def fuse_head_params(wmu, bmu, wsg, bsg):
    """One-time (plain-JAX) fusion: [Wmu | Wsg] zero-padded to 128 lanes."""
    n_hidden, n_actions = wmu.shape
    head = _round_up(2 * n_actions, LANE)
    w_head = jnp.zeros((n_hidden, head), jnp.float32)
    w_head = w_head.at[:, :n_actions].set(wmu)
    w_head = w_head.at[:, n_actions:2 * n_actions].set(wsg)
    b_head = jnp.zeros((1, head), jnp.float32)
    b_head = b_head.at[:, :n_actions].set(bmu)
    b_head = b_head.at[:, n_actions:2 * n_actions].set(bsg)
    return w_head, b_head


def reference_forward(x, w1, b1, wmu, bmu, wsg, bsg):
    h = jnp.maximum(x @ w1 + b1, 0.0)
    mu = 2.0 * jnp.tanh(h @ wmu + bmu)
    sigma = 0.5 * jax.nn.sigmoid(h @ wsg + bsg) + 1e-5
    return mu, sigma


if __name__ == "__main__":
    n_states, n_actions, n_hidden = 8, 1, 32

    key = jax.random.PRNGKey(0)
    kx, kx2, kp = jax.random.split(key, 3)
    w1, b1, wmu, bmu, wsg, bsg = make_params(kp, n_states, n_actions, n_hidden)
    w_head, b_head = fuse_head_params(wmu, bmu, wsg, bsg)

    # --- small batch (fills all 8 f32 sublanes; single grid step) ---
    x = jax.random.normal(kx, (8, n_states), dtype=jnp.float32)
    mu, sigma = actor_forward(x, w1, b1, w_head, b_head, n_actions=n_actions)
    jax.block_until_ready((mu, sigma))
    mu_ref, sigma_ref = reference_forward(x, w1, b1, wmu, bmu, wsg, bsg)
    assert jnp.allclose(mu, mu_ref, atol=1e-5), (mu, mu_ref)
    assert jnp.allclose(sigma, sigma_ref, atol=1e-5), (sigma, sigma_ref)

    # --- larger batch exercising the batch grid (2 tiles of 512) ---
    x_big = jax.random.normal(kx2, (1024, n_states), dtype=jnp.float32)
    mu_b, sigma_b = actor_forward(x_big, w1, b1, w_head, b_head, n_actions=n_actions)
    jax.block_until_ready((mu_b, sigma_b))
    mu_bref, sigma_bref = reference_forward(x_big, w1, b1, wmu, bmu, wsg, bsg)
    assert jnp.allclose(mu_b, mu_bref, atol=1e-5)
    assert jnp.allclose(sigma_b, sigma_bref, atol=1e-5)

    # Mirror the PyTorch return for a single sample: Normal(mu.view(1), sigma.view(1))
    dist = Normal(loc=mu[0].reshape(1), scale=sigma[0].reshape(1))
    jax.block_until_ready((dist.loc, dist.scale))

    print("KERNEL_OK")
</pallas_src>

<mosaic_0001>
module attributes {stable_mosaic.version = 11 : i64} {
  func.func @_actor_kernel(%arg0: i32, %arg1: memref<8x8xf32, #tpu.memory_space<vmem>>, %arg2: memref<8x32xf32, #tpu.memory_space<vmem>>, %arg3: memref<1x32xf32, #tpu.memory_space<vmem>>, %arg4: memref<32x128xf32, #tpu.memory_space<vmem>>, %arg5: memref<1x128xf32, #tpu.memory_space<vmem>>, %arg6: memref<8x128xf32, #tpu.memory_space<vmem>>) attributes {dimension_semantics = [#tpu.dimension_semantics<parallel>], iteration_bounds = array<i64: 1>, scalar_prefetch = 0 : i64, scratch_operands = 0 : i64, tpu.core_type = #tpu.core_type<tc>, window_params = [{transform_indices = @transform_0, window_bounds = array<i64: 8, 8>}, {pipeline_mode = #tpu.pipeline_mode<synchronous>, transform_indices = @transform_1, window_bounds = array<i64: 8, 32>}, {pipeline_mode = #tpu.pipeline_mode<synchronous>, transform_indices = @transform_2, window_bounds = array<i64: 1, 32>}, {pipeline_mode = #tpu.pipeline_mode<synchronous>, transform_indices = @transform_3, window_bounds = array<i64: 32, 128>}, {pipeline_mode = #tpu.pipeline_mode<synchronous>, transform_indices = @transform_4, window_bounds = array<i64: 1, 128>}, {transform_indices = @transform_5, window_bounds = array<i64: 8, 128>}]} {
    %c0 = arith.constant 0 : index
    %c0_0 = arith.constant 0 : index
    %0 = vector.load %arg1[%c0, %c0_0] : memref<8x8xf32, #tpu.memory_space<vmem>>, vector<8x8xf32>
    %c0_1 = arith.constant 0 : index
    %c0_2 = arith.constant 0 : index
    %1 = vector.load %arg2[%c0_1, %c0_2] : memref<8x32xf32, #tpu.memory_space<vmem>>, vector<8x32xf32>
    %cst = arith.constant dense<0.000000e+00> : vector<8x32xf32>
    %2 = tpu.matmul %0, %1, %cst {dimension_numbers = #tpu.dot_dimension_numbers<[1], [0], [0], [1], [0, 0, 1, 1], [], []>} : vector<8x8xf32>, vector<8x32xf32>, vector<8x32xf32> -> vector<8x32xf32>
    %c0_3 = arith.constant 0 : index
    %c0_4 = arith.constant 0 : index
    %3 = vector.load %arg3[%c0_3, %c0_4] : memref<1x32xf32, #tpu.memory_space<vmem>>, vector<1x32xf32>
    %4 = vector.broadcast %3 : vector<1x32xf32> to vector<8x32xf32>
    %5 = arith.addf %2, %4 : vector<8x32xf32>
    %cst_5 = arith.constant 0.000000e+00 : f32
    %6 = vector.broadcast %cst_5 : f32 to vector<8x32xf32>
    %7 = arith.maximumf %5, %6 : vector<8x32xf32>
    %c0_6 = arith.constant 0 : index
    %c0_7 = arith.constant 0 : index
    %8 = vector.load %arg4[%c0_6, %c0_7] : memref<32x128xf32, #tpu.memory_space<vmem>>, vector<32x128xf32>
    %cst_8 = arith.constant dense<0.000000e+00> : vector<8x128xf32>
    %9 = tpu.matmul %7, %8, %cst_8 {dimension_numbers = #tpu.dot_dimension_numbers<[1], [0], [0], [1], [0, 0, 1, 1], [], []>} : vector<8x32xf32>, vector<32x128xf32>, vector<8x128xf32> -> vector<8x128xf32>
    %c0_9 = arith.constant 0 : index
    %c0_10 = arith.constant 0 : index
    %10 = vector.load %arg5[%c0_9, %c0_10] : memref<1x128xf32, #tpu.memory_space<vmem>>, vector<1x128xf32>
    %11 = vector.broadcast %10 : vector<1x128xf32> to vector<8x128xf32>
    %12 = arith.addf %9, %11 : vector<8x128xf32>
    %13 = tpu.iota {dimensions = array<i32: 1>} : vector<8x128xi32>
    %14 = math.tanh %12 : vector<8x128xf32>
    %cst_11 = arith.constant 2.000000e+00 : f32
    %15 = vector.broadcast %cst_11 : f32 to vector<8x128xf32>
    %16 = arith.mulf %15, %14 : vector<8x128xf32>
    %17 = arith.negf %12 : vector<8x128xf32>
    %18 = math.exp %17 : vector<8x128xf32>
    %cst_12 = arith.constant 1.000000e+00 : f32
    %19 = vector.broadcast %cst_12 : f32 to vector<8x128xf32>
    %20 = arith.addf %19, %18 : vector<8x128xf32>
    %21 = arith.divf %19, %20 : vector<8x128xf32>
    %cst_13 = arith.constant 5.000000e-01 : f32
    %22 = vector.broadcast %cst_13 : f32 to vector<8x128xf32>
    %23 = arith.mulf %22, %21 : vector<8x128xf32>
    %cst_14 = arith.constant 9.99999974E-6 : f32
    %24 = vector.broadcast %cst_14 : f32 to vector<8x128xf32>
    %25 = arith.addf %23, %24 : vector<8x128xf32>
    %c1_i32 = arith.constant 1 : i32
    %26 = vector.broadcast %c1_i32 : i32 to vector<8x128xi32>
    %27 = arith.cmpi slt, %13, %26 : vector<8x128xi32>
    %28 = arith.select %27, %16, %25 : vector<8x128xi1>, vector<8x128xf32>
    %c0_15 = arith.constant 0 : index
    %c0_16 = arith.constant 0 : index
    %29 = vector.load %arg6[%c0_15, %c0_16] : memref<8x128xf32, #tpu.memory_space<vmem>>, vector<8x128xf32>
    tpu.vector_store %arg6[%c0_15, %c0_16], %28 {strides = array<i32>} : memref<8x128xf32, #tpu.memory_space<vmem>>, vector<8x128xf32>,
    return
  }
  func.func @transform_0(%arg0: i32) -> (i32, i32) {
    %c0_i32 = arith.constant 0 : i32
    %c0_i32_0 = arith.constant 0 : i32
    return %arg0, %c0_i32 : i32, i32
  }
  func.func @transform_1(%arg0: i32) -> (i32, i32) {
    %c0_i32 = arith.constant 0 : i32
    %c0_i32_0 = arith.constant 0 : i32
    %c0_i32_1 = arith.constant 0 : i32
    return %c0_i32, %c0_i32_0 : i32, i32
  }
  func.func @transform_2(%arg0: i32) -> (i32, i32) {
    %c0_i32 = arith.constant 0 : i32
    %c0_i32_0 = arith.constant 0 : i32
    %c0_i32_1 = arith.constant 0 : i32
    return %c0_i32, %c0_i32_0 : i32, i32
  }
  func.func @transform_3(%arg0: i32) -> (i32, i32) {
    %c0_i32 = arith.constant 0 : i32
    %c0_i32_0 = arith.constant 0 : i32
    %c0_i32_1 = arith.constant 0 : i32
    return %c0_i32, %c0_i32_0 : i32, i32
  }
  func.func @transform_4(%arg0: i32) -> (i32, i32) {
    %c0_i32 = arith.constant 0 : i32
    %c0_i32_0 = arith.constant 0 : i32
    %c0_i32_1 = arith.constant 0 : i32
    return %c0_i32, %c0_i32_0 : i32, i32
  }
  func.func @transform_5(%arg0: i32) -> (i32, i32) {
    %c0_i32 = arith.constant 0 : i32
    %c0_i32_0 = arith.constant 0 : i32
    return %arg0, %c0_i32 : i32, i32
  }
}

</mosaic_0001>

<bundles_post_ra>
// kernel: actor_forward.1
= control target key start
LH: loop header
LB: loop body
LE: loop exit
PB: predicated region body
PF: predicated region fallthrough
CT: control target
= control target key end

     0   :  { %10 = vsyncpa [#allocation3], 0  ;;  %s593_s0 = inlined_call_operand.hbm [shape: f32[8,8], index: 0, kind: input, shape index: {}]   ;;  %s594_s1 = inlined_call_operand.hbm [shape: f32[8,32], index: 1, kind: input, shape index: {}]   ;;  %s595_s2 = inlined_call_operand.hbm [shape: f32[1,32], index: 2, kind: input, shape index: {}]   ;;  %s596_s3 = inlined_call_operand.hbm [shape: f32[32,128], index: 3, kind: input, shape index: {}]   ;;  %s597_s4 = inlined_call_operand.hbm [shape: f32[1,128], index: 4, kind: input, shape index: {}]   ;;  %s598_s5 = inlined_call_operand.hbm [shape: f32[8,128], index: 5, kind: output, shape index: {}]  }
   0x1   :  { %11 = vsyncpa [#allocation6], 0 }
   0x2   :  { %12 = vsyncpa [#allocation9], 0 }
   0x3   :  { %13 = vsyncpa [#allocation4], 0  ;;  %s473_s18 = smov [#allocation5]   ;;  %s474_s20 = smov [#allocation8]  }
   0x4   :  { %s30_s19 = sshll.u32 %s473_s18, 4  ;;  %s49_s21 = sshll.u32 %s474_s20, 4  ;;  %s31_s19 = int_to_ptr.vmem [resolvable:$true] %s30_s19  ;;  %s514_s21 = int_to_ptr.vmem [resolvable:$true] %s49_s21 }
   0x5   :  { %s333_s24 = scalar_lea.hbm %s594_s1, 128 }
   0x6   :  { %p334_p0 = scmp.ne.s32.totalorder %s594_s1, %s333_s24  ;;  %p337_p1 = scmp.lt.u32.totalorder %s333_s24, %s594_s1 }
   0x8   :  { %p339_p2 = pnand %p337_p1, %p334_p0 }
   0xa   :  { %342 = shalt.err (!%p339_p2)
}
   0xb   :  { %s343_s29 = scalar_lea.vmem %s31_s19, 128  ;;  %p348_p4 = scmp.lt.s32.totalorder %s31_s19, %s31_s19 }
   0xc   :  { %p344_p3 = scmp.ne.s32.totalorder %s31_s19, %s343_s29  ;;  %p349_p5 = scmp.lt.s32.totalorder %s343_s29, %s343_s29 }
   0xe   :  { %p350_p6 = por %p349_p5, %p348_p4 }
  0x10   :  { %p351_p7 = pnand %p350_p6, %p344_p3 }
  0x12   :  { %354 = shalt.err (!%p351_p7)
}
  0x13   :  { %33 = dma.hbm_to_vmem [thread:$0]  %s594_s1, 128, %s31_s19, [#allocation6]  }
  0x14   :  { %s355_s9 = scalar_lea.hbm %s596_s3, 512 }
  0x15   :  { %p356_p8 = scmp.ne.s32.totalorder %s596_s3, %s355_s9  ;;  %p359_p9 = scmp.lt.u32.totalorder %s355_s9, %s596_s3 }
  0x17   :  { %p361_p10 = pnand %p359_p9, %p356_p8 }
  0x19   :  { %364 = shalt.err (!%p361_p10)
}
  0x1a   :  { %s365_s14 = scalar_lea.vmem %s514_s21, 512  ;;  %p370_p12 = scmp.lt.s32.totalorder %s514_s21, %s514_s21 }
  0x1b   :  { %p366_p11 = scmp.ne.s32.totalorder %s514_s21, %s365_s14  ;;  %p371_p13 = scmp.lt.s32.totalorder %s365_s14, %s365_s14 }
  0x1d   :  { %p372_p0 = por %p371_p13, %p370_p12 }
  0x1f   :  { %p373_p1 = pnand %p372_p0, %p366_p11 }
  0x21   :  { %376 = shalt.err (!%p373_p1)
}
  0x22   :  { %s475_s1 = smov 128   ;;  %s476_s15 = smov 8  }
  0x23   :  { %55 = dma.hbm_to_vmem [thread:$0]  %s596_s3, 512, %s514_s21, [#allocation9], %s475_s1, %s475_s1, %s476_s15  }
  0x24   :  { %s477_s18 = smov [#allocation2]   ;;  %s478_s20 = smov [#allocation7]  }
  0x25   :  { %s20_s19 = sshll.u32 %s477_s18, 4  ;;  %s40_s22 = sshll.u32 %s478_s20, 4  ;;  %s21_s19 = int_to_ptr.vmem [resolvable:$true] %s20_s19  ;;  %s41_s22 = int_to_ptr.vmem [resolvable:$true] %s40_s22 }
  0x26   :  { %s377_s25 = scalar_lea.hbm %s593_s0, 128 }
  0x27   :  { %p378_p2 = scmp.ne.s32.totalorder %s593_s0, %s377_s25  ;;  %p381_p3 = scmp.lt.u32.totalorder %s377_s25, %s593_s0 }
  0x29   :  { %p383_p4 = pnand %p381_p3, %p378_p2 }
  0x2b   :  { %386 = shalt.err (!%p383_p4)
}
  0x2c   :  { %s387_s3 = scalar_lea.vmem %s21_s19, 128  ;;  %p392_p6 = scmp.lt.s32.totalorder %s21_s19, %s21_s19 }
  0x2d   :  { %p388_p5 = scmp.ne.s32.totalorder %s21_s19, %s387_s3  ;;  %p393_p7 = scmp.lt.s32.totalorder %s387_s3, %s387_s3 }
  0x2f   :  { %p394_p8 = por %p393_p7, %p392_p6 }
  0x31   :  { %p395_p9 = pnand %p394_p8, %p388_p5 }
  0x33   :  { %398 = shalt.err (!%p395_p9)
}
  0x34   :  { %23 = dma.hbm_to_vmem [thread:$0]  %s593_s0, 128, %s21_s19, [#allocation3]  }
  0x35   :  { %s399_s8 = scalar_lea.hbm %s595_s2, 16 }
  0x36   :  { %p400_p10 = scmp.ne.s32.totalorder %s595_s2, %s399_s8  ;;  %p403_p11 = scmp.lt.u32.totalorder %s399_s8, %s595_s2 }
  0x38   :  { %p405_p12 = pnand %p403_p11, %p400_p10 }
  0x3a   :  { %408 = shalt.err (!%p405_p12)
}
  0x3b   :  { %s409_s13 = scalar_lea.vmem %s41_s22, 16  ;;  %s413_s14 = scalar_lea.vmem %s41_s22, 32 }
  0x3c   :  { %p410_p13 = scmp.ne.s32.totalorder %s41_s22, %s409_s13  ;;  %p414_p0 = scmp.lt.s32.totalorder %s41_s22, %s41_s22 }
  0x3d   :  { %p415_p1 = scmp.lt.s32.totalorder %s413_s14, %s409_s13 }
  0x3f   :  { %p416_p2 = por %p415_p1, %p414_p0 }
  0x41   :  { %p417_p3 = pnand %p416_p2, %p410_p13 }
  0x43   :  { %420 = shalt.err (!%p417_p3)
}
  0x44   :  { %43 = dma.hbm_to_vmem [thread:$0]  %s595_s2, 16, %s41_s22, [#allocation6]  }
  0x45   :  { %s479_s15 = smov [#allocation10]   ;;  %s421_s19 = scalar_lea.hbm %s597_s4, 16 }
  0x46   :  { %s62_s16 = sshll.u32 %s479_s15, 4  ;;  %p422_p4 = scmp.ne.s32.totalorder %s597_s4, %s421_s19  ;;  %s63_s16 = int_to_ptr.vmem [resolvable:$true] %s62_s16 }
  0x47   :  { %p425_p5 = scmp.lt.u32.totalorder %s421_s19, %s597_s4 }
  0x49   :  { %p427_p6 = pnand %p425_p5, %p422_p4 }
  0x4b   :  { %430 = shalt.err (!%p427_p6)
}
  0x4c   :  { %s431_s26 = scalar_lea.vmem %s63_s16, 16  ;;  %s435_s2 = scalar_lea.vmem %s63_s16, 32 }
  0x4d   :  { %p432_p7 = scmp.ne.s32.totalorder %s63_s16, %s431_s26  ;;  %p436_p8 = scmp.lt.s32.totalorder %s63_s16, %s63_s16 }
  0x4e   :  { %p437_p9 = scmp.lt.s32.totalorder %s435_s2, %s431_s26 }
  0x50   :  { %p438_p10 = por %p437_p9, %p436_p8 }
  0x52   :  { %p439_p11 = pnand %p438_p10, %p432_p7 }
  0x54   :  { %442 = shalt.err (!%p439_p11)
}
  0x55   :  { %65 = dma.hbm_to_vmem [thread:$0]  %s597_s4, 16, %s63_s16, [#allocation9]  }
  0x56   :  { %465 = dma.done.wait [#allocation3], 128  }
  0x57   :  { %466 = vsyncadd [#allocation3], 4294967168 }
  0x58   :  { %467 = dma.done.wait [#allocation6], 144  }
  0x59   :  { %468 = vsyncadd [#allocation6], 4294967152 }
  0x5a   :  { %469 = dma.done.wait [#allocation9], 528  }
  0x5b   :  { %470 = vsyncadd [#allocation9], 4294966768  ;;  %v480_v0 = vmov 0.0   ;;  %vm481_vm0 = vmmov 0   ;;  %v482_v1 = vmov 0.0|0.0   ;;  %vm90_vm1 = vcmask 64512  }
  0x5c   :  { %294 = vmatprep.subr.mxu0 %v480_v0  ;;  %296 = vmatprep.mubr.msk.f32.mxu0 %vm481_vm0, %v480_v0  ;;  %v82_v2 = vld [vmem:[#allocation5] sm:$0xff]  ;;  %v81_v3 = vld [vmem:[#allocation2] sm:$0xff]  ;;  %v165_v4 = vld [vmem:[#allocation8] sm:$0xff]  ;;  %vm176_vm2 = vcmask 261120   ;;  %v250_v22 = vlaneseq  ;;  %s483_s4 = smov [#allocation11]  }
  0x5d   :  { %310 = vmatprep.subr.bf16.mxu1 %v482_v1  ;;  %307 = vmatprep.mubr.msk.f32.mxu1 %vm481_vm0, %v480_v0  ;;  %v166_v5 = vld [vmem:[#allocation8 + $0x8] sm:$0xff]  ;;  %v167_v7 = vld [vmem:[#allocation8 + $0x10] sm:$0xff]  ;;  %v168_v8 = vld [vmem:[#allocation8 + $0x18] sm:$0xff]  ;;  %s271_s28 = sshll.u32 %s483_s4, 4  ;;  %s272_s28 = int_to_ptr.vmem [resolvable:$true] %s271_s28 }
  0x5e   :  { %295 = vmatpush3.msra.mxu0 %v82_v2  ;;  %v311_v6 = vpack.c.bf16 %v166_v5, %v165_v4  ;;  %v314_v9 = vpack.c.bf16 %v168_v8, %v167_v7  ;;  %v282_v10 = vld [vmem:[#allocation7] ss:$0 sm:$0xff]  ;;  %v284_v15 = vld [vmem:[#allocation10] ss:$0 sm:$0xff]  ;;  %v251_v23 = vand.u32 127, %v250_v22  ;;  %s443_s29 = scalar_lea.vmem %s272_s28, 128  ;;  %p448_p13 = scmp.lt.s32.totalorder %s272_s28, %s272_s28 }
  0x5f   :  { %297 = vmatmul.mubr.msk.f32.vlgmr.msra.gmra.mrb[0].mxu0 %vm90_vm1, %v81_v3  ;;  %p444_p12 = scmp.ne.s32.totalorder %s272_s28, %s443_s29  ;;  %p449_p0 = scmp.lt.s32.totalorder %s443_s29, %s443_s29 }
  0x60   :  { %312 = vmatpush3.bf16.msra.mxu1 %v311_v6  ;;  %vm262_vm3 = vcmp.lt.s32.totalorder %v251_v23, 1 }
  0x61   :  { %313 = vmatprep.subr.bf16.mxu1 %v482_v1  ;;  %p450_p1 = por %p449_p0, %p448_p13 }
  0x63   :  { %p451_p2 = pnand %p450_p1, %p444_p12 }
  0x64   :  { %315 = vmatpush3.bf16.msra.mxu1 %v314_v9 }
 0x132   :  { %v160_v11 = vpop.f32.mrb[0].mxu0 }
 0x133   :  { %v161_v12 = vadd.f32 %v282_v10, %v160_v11  ;;  %v298_v13 = vpop.f32.mrb[1].mxu0 }
 0x135   :  { %v164_v14 = vmax.f32 %v161_v12, 0.0 }
 0x137   :  { %308 = vmatmul.mubr.msk.f32.vlgmr.msra.gmra.mrb[0].mxu1 %vm176_vm2, %v164_v14 }
 0x20a   :  { %v246_v16 = vpop.f32.mrb[0].mxu1 }
 0x20b   :  { %v247_v17 = vadd.f32 %v284_v15, %v246_v16  ;;  %v309_v18 = vpop.f32.mrb[1].mxu1 }
 0x20d   :  { %v286_v19 = vmul.f32 -1.442695, %v247_v17 }
 0x20f   :  { %327 = vpow2.f32 %v286_v19 }
 0x210   :  { %329 = vtanh.f32 %v247_v17 }
 0x219   :  { %v328_v20 = vpop.eup %327 }
 0x21a   :  { %v257_v21 = vadd.f32 1.0, %v328_v20  ;;  %v330_v24 = vpop.eup %329 }
 0x21b   :  { %v253_v27 = vmul.f32 2.0, %v330_v24 }
 0x21c   :  { %331 = vrcp.f32 %v257_v21 }
 0x226   :  { %v332_v25 = vpop.eup %331 }
 0x227   :  { %v260_v26 = vmul.f32 0.5, %v332_v25 }
 0x229   :  { %v261_v28 = vadd.f32 1e-05, %v260_v26 }
 0x22b   :  { %v263_v29 = vsel %vm262_vm3, %v253_v27, %v261_v28 }
 0x22c   :  { %264 = vst [vmem:[#allocation11] sm:$0xff] %v263_v29 }
 0x22d   :  { %454 = shalt.err (!%p451_p2)
}
 0x22e   :  { %s455_s30 = scalar_lea.hbm %s598_s5, 128 }
 0x22f   :  { %p456_p3 = scmp.ne.s32.totalorder %s598_s5, %s455_s30  ;;  %p459_p4 = scmp.lt.u32.totalorder %s455_s30, %s598_s5 }
 0x231   :  { %p461_p5 = pnand %p459_p4, %p456_p3 }
 0x233   :  { %464 = shalt.err (!%p461_p5)
}
 0x234   :  { %274 = dma.vmem_to_hbm [thread:$0]  %s272_s28, 128, %s598_s5, [#allocation4]  }
 0x235   :  { %471 = dma.done.wait [#allocation4], 128  }
 0x236   :  { %472 = vsyncadd [#allocation4], 4294967168 }
 0x237   :  { %278 = vsyncpa [#allocation3], 1 }
 0x238   :  { %279 = vsyncpa [#allocation6], 1 }
 0x239   :  { %280 = vsyncpa [#allocation9], 1 }
 0x23a   :  { %281 = vsyncpa [#allocation4], 1 }

</bundles_post_ra>
